<compile_context>
chip_gen: v7x
topology: tpu7x:2x2x1
jax: 0.10.0
libtpu: 0.0.40
codegen_flags: <defaults>
</compile_context>

<pallas_src>
import jax
import jax.numpy as jnp
from jax import lax
from jax.experimental import pallas as pl
from jax.experimental.pallas import tpu as pltpu


def vit_attention(x, w_qkv, b_qkv, w_proj, b_proj, *, heads):
    """x: (B, N, C); w_qkv: (3C, C); b_qkv: (3C,); w_proj: (C, C); b_proj: (C,).

    Matches `Attention.forward` of the PyTorch module (no residual is added
    inside forward, despite the docstring of the module).
    """
    B, N, C = x.shape
    dh = C // heads
    scale = float(dh) ** -0.5

    # x @ W form.  Column order of w_qkv.T is already [q_h0..q_hH | k_h0.. | v_h0..]
    # head-major, matching the PyTorch reshape(B,N,3,H,dh) convention.
    wqkv = jnp.transpose(w_qkv)                       # (C, 3C) f32
    wqkv = wqkv.at[:, :C].multiply(scale)             # fold softmax scale into Q
    wqkv = wqkv.astype(jnp.bfloat16)
    bqkv = b_qkv.at[:C].multiply(scale).reshape(1, 3 * C).astype(jnp.float32)

    wp = jnp.transpose(w_proj).astype(jnp.bfloat16)   # (C, C), x @ W form
    bp = b_proj.reshape(1, C).astype(jnp.float32)

    x_bf16 = x.astype(jnp.bfloat16)

    def kernel(x_ref, wqkv_ref, bqkv_ref, wp_ref, bp_ref, o_ref, oh_ref):
        xb = x_ref[0]                                                    # (N, C) bf16

        # Fused QKV projection: one full-width matmul + one bias add.
        qkv = jnp.dot(xb, wqkv_ref[...], preferred_element_type=jnp.float32)
        qkv = (qkv + bqkv_ref[...]).astype(jnp.bfloat16)                 # (N, 3C)

        # Per-head attention (static unrolled loop; weights stay resident).
        for h in range(heads):
            lo, hi = h * dh, (h + 1) * dh
            q = qkv[:, lo:hi]                                            # (N, dh) bf16 (scaled)
            k = qkv[:, C + lo:C + hi]                                    # (N, dh) bf16
            v = qkv[:, 2 * C + lo:2 * C + hi]                            # (N, dh) bf16

            # scores = q @ k^T (contract last dims, no explicit transpose).
            s = lax.dot_general(q, k, (((1,), (1,)), ((), ())),
                                preferred_element_type=jnp.float32)      # (N, N)

            # Numerically-stable softmax in f32; exact reciprocal (EUP).
            s = s - jnp.max(s, axis=-1, keepdims=True)
            p = jnp.exp(s)
            p = p / jnp.sum(p, axis=-1, keepdims=True)

            o_h = jnp.dot(p.astype(jnp.bfloat16), v,
                          preferred_element_type=jnp.float32)            # (N, dh)
            oh_ref[:, lo:hi] = o_h                                       # head-major gather

        # Output projection: single deep (C-contraction) full-width matmul.
        out = jnp.dot(oh_ref[...].astype(jnp.bfloat16), wp_ref[...],
                      preferred_element_type=jnp.float32) + bp_ref[...]  # (N, C)
        o_ref[0] = out.astype(o_ref.dtype)

    return pl.pallas_call(
        kernel,
        out_shape=jax.ShapeDtypeStruct((B, N, C), x.dtype),
        grid_spec=pltpu.PrefetchScalarGridSpec(
            num_scalar_prefetch=0,
            grid=(B,),
            in_specs=[
                pl.BlockSpec((1, N, C), lambda b: (b, 0, 0)),   # x (per batch)
                pl.BlockSpec((C, 3 * C), lambda b: (0, 0)),     # Wqkv (VMEM resident)
                pl.BlockSpec((1, 3 * C), lambda b: (0, 0)),     # b_qkv
                pl.BlockSpec((C, C), lambda b: (0, 0)),         # Wproj
                pl.BlockSpec((1, C), lambda b: (0, 0)),         # b_proj
            ],
            out_specs=pl.BlockSpec((1, N, C), lambda b: (b, 0, 0)),
            scratch_shapes=[pltpu.VMEM((N, C), jnp.float32)],   # head-major attn output
        ),
        compiler_params=pltpu.CompilerParams(
            dimension_semantics=("parallel",),
            vmem_limit_bytes=48 * 1024 * 1024),
    )(x_bf16, wqkv, bqkv, wp, bp)
    # TODO(synk): for v7x with B == 1, add a second "parallel" grid axis over
    # 128-row token tiles of N so both TensorCores are used.


def _reference(x, w_qkv, b_qkv, w_proj, b_proj, heads):
    """Pure-JAX (f32) mirror of the PyTorch forward, for verification."""
    B, N, C = x.shape
    dh = C // heads
    scale = dh ** -0.5
    qkv = x @ w_qkv.T + b_qkv                        # (B, N, 3C)
    qkv = qkv.reshape(B, N, 3, heads, dh).transpose(2, 0, 3, 1, 4)
    q, k, v = qkv[0], qkv[1], qkv[2]                 # (B, H, N, dh)
    attn = jnp.einsum("bhnd,bhmd->bhnm", q, k) * scale
    attn = jax.nn.softmax(attn, axis=-1)
    out = jnp.einsum("bhnm,bhmd->bhnd", attn, v)     # (B, H, N, dh)
    out = out.transpose(0, 2, 1, 3).reshape(B, N, C)
    return out @ w_proj.T + b_proj


if __name__ == "__main__":
    B, N, C, HEADS = 2, 8, 32, 8

    key = jax.random.PRNGKey(0)
    kx, k1, k2, k3, k4 = jax.random.split(key, 5)
    x = jax.random.normal(kx, (B, N, C), dtype=jnp.float32)
    # Deterministic synthetic parameters (nn.Linear shapes: (out, in) + (out,)).
    w_qkv = jax.random.normal(k1, (3 * C, C), dtype=jnp.float32) * 0.05
    b_qkv = jax.random.normal(k2, (3 * C,), dtype=jnp.float32) * 0.05
    w_proj = jax.random.normal(k3, (C, C), dtype=jnp.float32) * 0.05
    b_proj = jax.random.normal(k4, (C,), dtype=jnp.float32) * 0.05

    out = vit_attention(x, w_qkv, b_qkv, w_proj, b_proj, heads=HEADS)
    out = jax.block_until_ready(out)

    ref = _reference(x, w_qkv, b_qkv, w_proj, b_proj, HEADS)
    assert out.shape == (B, N, C)
    # bf16 MXU operands -> bf16-level tolerance (exact softmax reciprocal now).
    assert jnp.allclose(out, ref, atol=2e-2, rtol=2e-2), "mismatch vs reference"
    print("KERNEL_OK")
</pallas_src>

<mosaic_0001>
module attributes {stable_mosaic.version = 11 : i64} {
  func.func @kernel(%arg0: i32, %arg1: memref<1x8x32xbf16, #tpu.memory_space<vmem>>, %arg2: memref<32x96xbf16, #tpu.memory_space<vmem>>, %arg3: memref<1x96xf32, #tpu.memory_space<vmem>>, %arg4: memref<32x32xbf16, #tpu.memory_space<vmem>>, %arg5: memref<1x32xf32, #tpu.memory_space<vmem>>, %arg6: memref<1x8x32xf32, #tpu.memory_space<vmem>>, %arg7: memref<8x32xf32, #tpu.memory_space<vmem>>) attributes {dimension_semantics = [#tpu.dimension_semantics<parallel>], iteration_bounds = array<i64: 2>, scalar_prefetch = 0 : i64, scratch_operands = 1 : i64, tpu.core_type = #tpu.core_type<tc>, window_params = [{transform_indices = @transform_0, window_bounds = array<i64: 1, 8, 32>}, {pipeline_mode = #tpu.pipeline_mode<synchronous>, transform_indices = @transform_1, window_bounds = array<i64: 32, 96>}, {pipeline_mode = #tpu.pipeline_mode<synchronous>, transform_indices = @transform_2, window_bounds = array<i64: 1, 96>}, {pipeline_mode = #tpu.pipeline_mode<synchronous>, transform_indices = @transform_3, window_bounds = array<i64: 32, 32>}, {pipeline_mode = #tpu.pipeline_mode<synchronous>, transform_indices = @transform_4, window_bounds = array<i64: 1, 32>}, {transform_indices = @transform_5, window_bounds = array<i64: 1, 8, 32>}]} {
    %c0 = arith.constant 0 : index
    %c0_0 = arith.constant 0 : index
    %c0_1 = arith.constant 0 : index
    %0 = vector.load %arg1[%c0, %c0_0, %c0_1] : memref<1x8x32xbf16, #tpu.memory_space<vmem>>, vector<1x8x32xbf16>
    %1 = vector.shape_cast %0 : vector<1x8x32xbf16> to vector<8x32xbf16>
    %c0_2 = arith.constant 0 : index
    %c0_3 = arith.constant 0 : index
    %2 = vector.load %arg2[%c0_2, %c0_3] : memref<32x96xbf16, #tpu.memory_space<vmem>>, vector<32x96xbf16>
    %cst = arith.constant dense<0.000000e+00> : vector<8x96xf32>
    %3 = tpu.matmul %1, %2, %cst {dimension_numbers = #tpu.dot_dimension_numbers<[1], [0], [0], [1], [0, 0, 1, 1], [], []>} : vector<8x32xbf16>, vector<32x96xbf16>, vector<8x96xf32> -> vector<8x96xf32>
    %c0_4 = arith.constant 0 : index
    %c0_5 = arith.constant 0 : index
    %4 = vector.load %arg3[%c0_4, %c0_5] : memref<1x96xf32, #tpu.memory_space<vmem>>, vector<1x96xf32>
    %5 = vector.broadcast %4 : vector<1x96xf32> to vector<8x96xf32>
    %6 = arith.addf %3, %5 : vector<8x96xf32>
    %7 = arith.truncf %6 : vector<8x96xf32> to vector<8x96xbf16>
    %8 = vector.extract_strided_slice %7 {offsets = [0, 0], sizes = [8, 4], strides = [1, 1]} : vector<8x96xbf16> to vector<8x4xbf16>
    %9 = vector.extract_strided_slice %7 {offsets = [0, 32], sizes = [8, 4], strides = [1, 1]} : vector<8x96xbf16> to vector<8x4xbf16>
    %10 = vector.extract_strided_slice %7 {offsets = [0, 64], sizes = [8, 4], strides = [1, 1]} : vector<8x96xbf16> to vector<8x4xbf16>
    %cst_6 = arith.constant dense<0.000000e+00> : vector<8x8xf32>
    %11 = tpu.matmul %8, %9, %cst_6 {dimension_numbers = #tpu.dot_dimension_numbers<[1], [1], [0], [0], [0, 0, 1, 0], [], []>} : vector<8x4xbf16>, vector<8x4xbf16>, vector<8x8xf32> -> vector<8x8xf32>
    %cst_7 = arith.constant dense<0xFF800000> : vector<8xf32>
    %12 = vector.multi_reduction <maximumf>, %11, %cst_7 [1] : vector<8x8xf32> to vector<8xf32>
    %13 = vector.shape_cast %12 : vector<8xf32> to vector<8x1xf32>
    %14 = vector.broadcast %13 : vector<8x1xf32> to vector<8x8xf32>
    %15 = arith.subf %11, %14 : vector<8x8xf32>
    %16 = math.exp %15 : vector<8x8xf32>
    %cst_8 = arith.constant dense<0.000000e+00> : vector<8xf32>
    %17 = vector.multi_reduction <add>, %16, %cst_8 [1] : vector<8x8xf32> to vector<8xf32>
    %18 = vector.shape_cast %17 : vector<8xf32> to vector<8x1xf32>
    %19 = vector.broadcast %18 : vector<8x1xf32> to vector<8x8xf32>
    %20 = arith.divf %16, %19 : vector<8x8xf32>
    %21 = arith.truncf %20 : vector<8x8xf32> to vector<8x8xbf16>
    %cst_9 = arith.constant dense<0.000000e+00> : vector<8x4xf32>
    %22 = tpu.matmul %21, %10, %cst_9 {dimension_numbers = #tpu.dot_dimension_numbers<[1], [0], [0], [1], [0, 0, 1, 1], [], []>} : vector<8x8xbf16>, vector<8x4xbf16>, vector<8x4xf32> -> vector<8x4xf32>
    %c0_10 = arith.constant 0 : index
    %c0_11 = arith.constant 0 : index
    %23 = vector.load %arg7[%c0_10, %c0_11] : memref<8x32xf32, #tpu.memory_space<vmem>>, vector<8x4xf32>
    tpu.vector_store %arg7[%c0_10, %c0_11], %22 {strides = array<i32>} : memref<8x32xf32, #tpu.memory_space<vmem>>, vector<8x4xf32>,
    %24 = vector.extract_strided_slice %7 {offsets = [0, 4], sizes = [8, 4], strides = [1, 1]} : vector<8x96xbf16> to vector<8x4xbf16>
    %25 = vector.extract_strided_slice %7 {offsets = [0, 36], sizes = [8, 4], strides = [1, 1]} : vector<8x96xbf16> to vector<8x4xbf16>
    %26 = vector.extract_strided_slice %7 {offsets = [0, 68], sizes = [8, 4], strides = [1, 1]} : vector<8x96xbf16> to vector<8x4xbf16>
    %cst_12 = arith.constant dense<0.000000e+00> : vector<8x8xf32>
    %27 = tpu.matmul %24, %25, %cst_12 {dimension_numbers = #tpu.dot_dimension_numbers<[1], [1], [0], [0], [0, 0, 1, 0], [], []>} : vector<8x4xbf16>, vector<8x4xbf16>, vector<8x8xf32> -> vector<8x8xf32>
    %cst_13 = arith.constant dense<0xFF800000> : vector<8xf32>
    %28 = vector.multi_reduction <maximumf>, %27, %cst_13 [1] : vector<8x8xf32> to vector<8xf32>
    %29 = vector.shape_cast %28 : vector<8xf32> to vector<8x1xf32>
    %30 = vector.broadcast %29 : vector<8x1xf32> to vector<8x8xf32>
    %31 = arith.subf %27, %30 : vector<8x8xf32>
    %32 = math.exp %31 : vector<8x8xf32>
    %cst_14 = arith.constant dense<0.000000e+00> : vector<8xf32>
    %33 = vector.multi_reduction <add>, %32, %cst_14 [1] : vector<8x8xf32> to vector<8xf32>
    %34 = vector.shape_cast %33 : vector<8xf32> to vector<8x1xf32>
    %35 = vector.broadcast %34 : vector<8x1xf32> to vector<8x8xf32>
    %36 = arith.divf %32, %35 : vector<8x8xf32>
    %37 = arith.truncf %36 : vector<8x8xf32> to vector<8x8xbf16>
    %cst_15 = arith.constant dense<0.000000e+00> : vector<8x4xf32>
    %38 = tpu.matmul %37, %26, %cst_15 {dimension_numbers = #tpu.dot_dimension_numbers<[1], [0], [0], [1], [0, 0, 1, 1], [], []>} : vector<8x8xbf16>, vector<8x4xbf16>, vector<8x4xf32> -> vector<8x4xf32>
    %c0_16 = arith.constant 0 : index
    %c4 = arith.constant 4 : index
    %39 = vector.load %arg7[%c0_16, %c4] : memref<8x32xf32, #tpu.memory_space<vmem>>, vector<8x4xf32>
    tpu.vector_store %arg7[%c0_16, %c4], %38 {strides = array<i32>} : memref<8x32xf32, #tpu.memory_space<vmem>>, vector<8x4xf32>,
    %40 = vector.extract_strided_slice %7 {offsets = [0, 8], sizes = [8, 4], strides = [1, 1]} : vector<8x96xbf16> to vector<8x4xbf16>
    %41 = vector.extract_strided_slice %7 {offsets = [0, 40], sizes = [8, 4], strides = [1, 1]} : vector<8x96xbf16> to vector<8x4xbf16>
    %42 = vector.extract_strided_slice %7 {offsets = [0, 72], sizes = [8, 4], strides = [1, 1]} : vector<8x96xbf16> to vector<8x4xbf16>
    %cst_17 = arith.constant dense<0.000000e+00> : vector<8x8xf32>
    %43 = tpu.matmul %40, %41, %cst_17 {dimension_numbers = #tpu.dot_dimension_numbers<[1], [1], [0], [0], [0, 0, 1, 0], [], []>} : vector<8x4xbf16>, vector<8x4xbf16>, vector<8x8xf32> -> vector<8x8xf32>
    %cst_18 = arith.constant dense<0xFF800000> : vector<8xf32>
    %44 = vector.multi_reduction <maximumf>, %43, %cst_18 [1] : vector<8x8xf32> to vector<8xf32>
    %45 = vector.shape_cast %44 : vector<8xf32> to vector<8x1xf32>
    %46 = vector.broadcast %45 : vector<8x1xf32> to vector<8x8xf32>
    %47 = arith.subf %43, %46 : vector<8x8xf32>
    %48 = math.exp %47 : vector<8x8xf32>
    %cst_19 = arith.constant dense<0.000000e+00> : vector<8xf32>
    %49 = vector.multi_reduction <add>, %48, %cst_19 [1] : vector<8x8xf32> to vector<8xf32>
    %50 = vector.shape_cast %49 : vector<8xf32> to vector<8x1xf32>
    %51 = vector.broadcast %50 : vector<8x1xf32> to vector<8x8xf32>
    %52 = arith.divf %48, %51 : vector<8x8xf32>
    %53 = arith.truncf %52 : vector<8x8xf32> to vector<8x8xbf16>
    %cst_20 = arith.constant dense<0.000000e+00> : vector<8x4xf32>
    %54 = tpu.matmul %53, %42, %cst_20 {dimension_numbers = #tpu.dot_dimension_numbers<[1], [0], [0], [1], [0, 0, 1, 1], [], []>} : vector<8x8xbf16>, vector<8x4xbf16>, vector<8x4xf32> -> vector<8x4xf32>
    %c0_21 = arith.constant 0 : index
    %c8 = arith.constant 8 : index
    %55 = vector.load %arg7[%c0_21, %c8] : memref<8x32xf32, #tpu.memory_space<vmem>>, vector<8x4xf32>
    tpu.vector_store %arg7[%c0_21, %c8], %54 {strides = array<i32>} : memref<8x32xf32, #tpu.memory_space<vmem>>, vector<8x4xf32>,
    %56 = vector.extract_strided_slice %7 {offsets = [0, 12], sizes = [8, 4], strides = [1, 1]} : vector<8x96xbf16> to vector<8x4xbf16>
    %57 = vector.extract_strided_slice %7 {offsets = [0, 44], sizes = [8, 4], strides = [1, 1]} : vector<8x96xbf16> to vector<8x4xbf16>
    %58 = vector.extract_strided_slice %7 {offsets = [0, 76], sizes = [8, 4], strides = [1, 1]} : vector<8x96xbf16> to vector<8x4xbf16>
    %cst_22 = arith.constant dense<0.000000e+00> : vector<8x8xf32>
    %59 = tpu.matmul %56, %57, %cst_22 {dimension_numbers = #tpu.dot_dimension_numbers<[1], [1], [0], [0], [0, 0, 1, 0], [], []>} : vector<8x4xbf16>, vector<8x4xbf16>, vector<8x8xf32> -> vector<8x8xf32>
    %cst_23 = arith.constant dense<0xFF800000> : vector<8xf32>
    %60 = vector.multi_reduction <maximumf>, %59, %cst_23 [1] : vector<8x8xf32> to vector<8xf32>
    %61 = vector.shape_cast %60 : vector<8xf32> to vector<8x1xf32>
    %62 = vector.broadcast %61 : vector<8x1xf32> to vector<8x8xf32>
    %63 = arith.subf %59, %62 : vector<8x8xf32>
    %64 = math.exp %63 : vector<8x8xf32>
    %cst_24 = arith.constant dense<0.000000e+00> : vector<8xf32>
    %65 = vector.multi_reduction <add>, %64, %cst_24 [1] : vector<8x8xf32> to vector<8xf32>
    %66 = vector.shape_cast %65 : vector<8xf32> to vector<8x1xf32>
    %67 = vector.broadcast %66 : vector<8x1xf32> to vector<8x8xf32>
    %68 = arith.divf %64, %67 : vector<8x8xf32>
    %69 = arith.truncf %68 : vector<8x8xf32> to vector<8x8xbf16>
    %cst_25 = arith.constant dense<0.000000e+00> : vector<8x4xf32>
    %70 = tpu.matmul %69, %58, %cst_25 {dimension_numbers = #tpu.dot_dimension_numbers<[1], [0], [0], [1], [0, 0, 1, 1], [], []>} : vector<8x8xbf16>, vector<8x4xbf16>, vector<8x4xf32> -> vector<8x4xf32>
    %c0_26 = arith.constant 0 : index
    %c12 = arith.constant 12 : index
    %71 = vector.load %arg7[%c0_26, %c12] : memref<8x32xf32, #tpu.memory_space<vmem>>, vector<8x4xf32>
    tpu.vector_store %arg7[%c0_26, %c12], %70 {strides = array<i32>} : memref<8x32xf32, #tpu.memory_space<vmem>>, vector<8x4xf32>,
    %72 = vector.extract_strided_slice %7 {offsets = [0, 16], sizes = [8, 4], strides = [1, 1]} : vector<8x96xbf16> to vector<8x4xbf16>
    %73 = vector.extract_strided_slice %7 {offsets = [0, 48], sizes = [8, 4], strides = [1, 1]} : vector<8x96xbf16> to vector<8x4xbf16>
    %74 = vector.extract_strided_slice %7 {offsets = [0, 80], sizes = [8, 4], strides = [1, 1]} : vector<8x96xbf16> to vector<8x4xbf16>
    %cst_27 = arith.constant dense<0.000000e+00> : vector<8x8xf32>
    %75 = tpu.matmul %72, %73, %cst_27 {dimension_numbers = #tpu.dot_dimension_numbers<[1], [1], [0], [0], [0, 0, 1, 0], [], []>} : vector<8x4xbf16>, vector<8x4xbf16>, vector<8x8xf32> -> vector<8x8xf32>
    %cst_28 = arith.constant dense<0xFF800000> : vector<8xf32>
    %76 = vector.multi_reduction <maximumf>, %75, %cst_28 [1] : vector<8x8xf32> to vector<8xf32>
    %77 = vector.shape_cast %76 : vector<8xf32> to vector<8x1xf32>
    %78 = vector.broadcast %77 : vector<8x1xf32> to vector<8x8xf32>
    %79 = arith.subf %75, %78 : vector<8x8xf32>
    %80 = math.exp %79 : vector<8x8xf32>
    %cst_29 = arith.constant dense<0.000000e+00> : vector<8xf32>
    %81 = vector.multi_reduction <add>, %80, %cst_29 [1] : vector<8x8xf32> to vector<8xf32>
    %82 = vector.shape_cast %81 : vector<8xf32> to vector<8x1xf32>
    %83 = vector.broadcast %82 : vector<8x1xf32> to vector<8x8xf32>
    %84 = arith.divf %80, %83 : vector<8x8xf32>
    %85 = arith.truncf %84 : vector<8x8xf32> to vector<8x8xbf16>
    %cst_30 = arith.constant dense<0.000000e+00> : vector<8x4xf32>
    %86 = tpu.matmul %85, %74, %cst_30 {dimension_numbers = #tpu.dot_dimension_numbers<[1], [0], [0], [1], [0, 0, 1, 1], [], []>} : vector<8x8xbf16>, vector<8x4xbf16>, vector<8x4xf32> -> vector<8x4xf32>
    %c0_31 = arith.constant 0 : index
    %c16 = arith.constant 16 : index
    %87 = vector.load %arg7[%c0_31, %c16] : memref<8x32xf32, #tpu.memory_space<vmem>>, vector<8x4xf32>
    tpu.vector_store %arg7[%c0_31, %c16], %86 {strides = array<i32>} : memref<8x32xf32, #tpu.memory_space<vmem>>, vector<8x4xf32>,
    %88 = vector.extract_strided_slice %7 {offsets = [0, 20], sizes = [8, 4], strides = [1, 1]} : vector<8x96xbf16> to vector<8x4xbf16>
    %89 = vector.extract_strided_slice %7 {offsets = [0, 52], sizes = [8, 4], strides = [1, 1]} : vector<8x96xbf16> to vector<8x4xbf16>
    %90 = vector.extract_strided_slice %7 {offsets = [0, 84], sizes = [8, 4], strides = [1, 1]} : vector<8x96xbf16> to vector<8x4xbf16>
    %cst_32 = arith.constant dense<0.000000e+00> : vector<8x8xf32>
    %91 = tpu.matmul %88, %89, %cst_32 {dimension_numbers = #tpu.dot_dimension_numbers<[1], [1], [0], [0], [0, 0, 1, 0], [], []>} : vector<8x4xbf16>, vector<8x4xbf16>, vector<8x8xf32> -> vector<8x8xf32>
    %cst_33 = arith.constant dense<0xFF800000> : vector<8xf32>
    %92 = vector.multi_reduction <maximumf>, %91, %cst_33 [1] : vector<8x8xf32> to vector<8xf32>
    %93 = vector.shape_cast %92 : vector<8xf32> to vector<8x1xf32>
    %94 = vector.broadcast %93 : vector<8x1xf32> to vector<8x8xf32>
    %95 = arith.subf %91, %94 : vector<8x8xf32>
    %96 = math.exp %95 : vector<8x8xf32>
    %cst_34 = arith.constant dense<0.000000e+00> : vector<8xf32>
    %97 = vector.multi_reduction <add>, %96, %cst_34 [1] : vector<8x8xf32> to vector<8xf32>
    %98 = vector.shape_cast %97 : vector<8xf32> to vector<8x1xf32>
    %99 = vector.broadcast %98 : vector<8x1xf32> to vector<8x8xf32>
    %100 = arith.divf %96, %99 : vector<8x8xf32>
    %101 = arith.truncf %100 : vector<8x8xf32> to vector<8x8xbf16>
    %cst_35 = arith.constant dense<0.000000e+00> : vector<8x4xf32>
    %102 = tpu.matmul %101, %90, %cst_35 {dimension_numbers = #tpu.dot_dimension_numbers<[1], [0], [0], [1], [0, 0, 1, 1], [], []>} : vector<8x8xbf16>, vector<8x4xbf16>, vector<8x4xf32> -> vector<8x4xf32>
    %c0_36 = arith.constant 0 : index
    %c20 = arith.constant 20 : index
    %103 = vector.load %arg7[%c0_36, %c20] : memref<8x32xf32, #tpu.memory_space<vmem>>, vector<8x4xf32>
    tpu.vector_store %arg7[%c0_36, %c20], %102 {strides = array<i32>} : memref<8x32xf32, #tpu.memory_space<vmem>>, vector<8x4xf32>,
    %104 = vector.extract_strided_slice %7 {offsets = [0, 24], sizes = [8, 4], strides = [1, 1]} : vector<8x96xbf16> to vector<8x4xbf16>
    %105 = vector.extract_strided_slice %7 {offsets = [0, 56], sizes = [8, 4], strides = [1, 1]} : vector<8x96xbf16> to vector<8x4xbf16>
    %106 = vector.extract_strided_slice %7 {offsets = [0, 88], sizes = [8, 4], strides = [1, 1]} : vector<8x96xbf16> to vector<8x4xbf16>
    %cst_37 = arith.constant dense<0.000000e+00> : vector<8x8xf32>
    %107 = tpu.matmul %104, %105, %cst_37 {dimension_numbers = #tpu.dot_dimension_numbers<[1], [1], [0], [0], [0, 0, 1, 0], [], []>} : vector<8x4xbf16>, vector<8x4xbf16>, vector<8x8xf32> -> vector<8x8xf32>
    %cst_38 = arith.constant dense<0xFF800000> : vector<8xf32>
    %108 = vector.multi_reduction <maximumf>, %107, %cst_38 [1] : vector<8x8xf32> to vector<8xf32>
    %109 = vector.shape_cast %108 : vector<8xf32> to vector<8x1xf32>
    %110 = vector.broadcast %109 : vector<8x1xf32> to vector<8x8xf32>
    %111 = arith.subf %107, %110 : vector<8x8xf32>
    %112 = math.exp %111 : vector<8x8xf32>
    %cst_39 = arith.constant dense<0.000000e+00> : vector<8xf32>
    %113 = vector.multi_reduction <add>, %112, %cst_39 [1] : vector<8x8xf32> to vector<8xf32>
    %114 = vector.shape_cast %113 : vector<8xf32> to vector<8x1xf32>
    %115 = vector.broadcast %114 : vector<8x1xf32> to vector<8x8xf32>
    %116 = arith.divf %112, %115 : vector<8x8xf32>
    %117 = arith.truncf %116 : vector<8x8xf32> to vector<8x8xbf16>
    %cst_40 = arith.constant dense<0.000000e+00> : vector<8x4xf32>
    %118 = tpu.matmul %117, %106, %cst_40 {dimension_numbers = #tpu.dot_dimension_numbers<[1], [0], [0], [1], [0, 0, 1, 1], [], []>} : vector<8x8xbf16>, vector<8x4xbf16>, vector<8x4xf32> -> vector<8x4xf32>
    %c0_41 = arith.constant 0 : index
    %c24 = arith.constant 24 : index
    %119 = vector.load %arg7[%c0_41, %c24] : memref<8x32xf32, #tpu.memory_space<vmem>>, vector<8x4xf32>
    tpu.vector_store %arg7[%c0_41, %c24], %118 {strides = array<i32>} : memref<8x32xf32, #tpu.memory_space<vmem>>, vector<8x4xf32>,
    %120 = vector.extract_strided_slice %7 {offsets = [0, 28], sizes = [8, 4], strides = [1, 1]} : vector<8x96xbf16> to vector<8x4xbf16>
    %121 = vector.extract_strided_slice %7 {offsets = [0, 60], sizes = [8, 4], strides = [1, 1]} : vector<8x96xbf16> to vector<8x4xbf16>
    %122 = vector.extract_strided_slice %7 {offsets = [0, 92], sizes = [8, 4], strides = [1, 1]} : vector<8x96xbf16> to vector<8x4xbf16>
    %cst_42 = arith.constant dense<0.000000e+00> : vector<8x8xf32>
    %123 = tpu.matmul %120, %121, %cst_42 {dimension_numbers = #tpu.dot_dimension_numbers<[1], [1], [0], [0], [0, 0, 1, 0], [], []>} : vector<8x4xbf16>, vector<8x4xbf16>, vector<8x8xf32> -> vector<8x8xf32>
    %cst_43 = arith.constant dense<0xFF800000> : vector<8xf32>
    %124 = vector.multi_reduction <maximumf>, %123, %cst_43 [1] : vector<8x8xf32> to vector<8xf32>
    %125 = vector.shape_cast %124 : vector<8xf32> to vector<8x1xf32>
    %126 = vector.broadcast %125 : vector<8x1xf32> to vector<8x8xf32>
    %127 = arith.subf %123, %126 : vector<8x8xf32>
    %128 = math.exp %127 : vector<8x8xf32>
    %cst_44 = arith.constant dense<0.000000e+00> : vector<8xf32>
    %129 = vector.multi_reduction <add>, %128, %cst_44 [1] : vector<8x8xf32> to vector<8xf32>
    %130 = vector.shape_cast %129 : vector<8xf32> to vector<8x1xf32>
    %131 = vector.broadcast %130 : vector<8x1xf32> to vector<8x8xf32>
    %132 = arith.divf %128, %131 : vector<8x8xf32>
    %133 = arith.truncf %132 : vector<8x8xf32> to vector<8x8xbf16>
    %cst_45 = arith.constant dense<0.000000e+00> : vector<8x4xf32>
    %134 = tpu.matmul %133, %122, %cst_45 {dimension_numbers = #tpu.dot_dimension_numbers<[1], [0], [0], [1], [0, 0, 1, 1], [], []>} : vector<8x8xbf16>, vector<8x4xbf16>, vector<8x4xf32> -> vector<8x4xf32>
    %c0_46 = arith.constant 0 : index
    %c28 = arith.constant 28 : index
    %135 = vector.load %arg7[%c0_46, %c28] : memref<8x32xf32, #tpu.memory_space<vmem>>, vector<8x4xf32>
    tpu.vector_store %arg7[%c0_46, %c28], %134 {strides = array<i32>} : memref<8x32xf32, #tpu.memory_space<vmem>>, vector<8x4xf32>,
    %c0_47 = arith.constant 0 : index
    %c0_48 = arith.constant 0 : index
    %136 = vector.load %arg7[%c0_47, %c0_48] : memref<8x32xf32, #tpu.memory_space<vmem>>, vector<8x32xf32>
    %137 = arith.truncf %136 : vector<8x32xf32> to vector<8x32xbf16>
    %c0_49 = arith.constant 0 : index
    %c0_50 = arith.constant 0 : index
    %138 = vector.load %arg4[%c0_49, %c0_50] : memref<32x32xbf16, #tpu.memory_space<vmem>>, vector<32x32xbf16>
    %cst_51 = arith.constant dense<0.000000e+00> : vector<8x32xf32>
    %139 = tpu.matmul %137, %138, %cst_51 {dimension_numbers = #tpu.dot_dimension_numbers<[1], [0], [0], [1], [0, 0, 1, 1], [], []>} : vector<8x32xbf16>, vector<32x32xbf16>, vector<8x32xf32> -> vector<8x32xf32>
    %c0_52 = arith.constant 0 : index
    %c0_53 = arith.constant 0 : index
    %140 = vector.load %arg5[%c0_52, %c0_53] : memref<1x32xf32, #tpu.memory_space<vmem>>, vector<1x32xf32>
    %141 = vector.broadcast %140 : vector<1x32xf32> to vector<8x32xf32>
    %142 = arith.addf %139, %141 : vector<8x32xf32>
    %c0_54 = arith.constant 0 : index
    %c0_55 = arith.constant 0 : index
    %c0_56 = arith.constant 0 : index
    %143 = vector.load %arg6[%c0_54, %c0_55, %c0_56] : memref<1x8x32xf32, #tpu.memory_space<vmem>>, vector<1x8x32xf32>
    %144 = vector.shape_cast %143 : vector<1x8x32xf32> to vector<8x32xf32>
    %145 = vector.shape_cast %142 : vector<8x32xf32> to vector<1x8x32xf32>
    tpu.vector_store %arg6[%c0_54, %c0_55, %c0_56], %145 {strides = array<i32>} : memref<1x8x32xf32, #tpu.memory_space<vmem>>, vector<1x8x32xf32>,
    return
  }
  func.func @transform_0(%arg0: i32) -> (i32, i32, i32) {
    %c0_i32 = arith.constant 0 : i32
    %c0_i32_0 = arith.constant 0 : i32
    %c0_i32_1 = arith.constant 0 : i32
    return %arg0, %c0_i32, %c0_i32_0 : i32, i32, i32
  }
  func.func @transform_1(%arg0: i32) -> (i32, i32) {
    %c0_i32 = arith.constant 0 : i32
    %c0_i32_0 = arith.constant 0 : i32
    %c0_i32_1 = arith.constant 0 : i32
    return %c0_i32, %c0_i32_0 : i32, i32
  }
  func.func @transform_2(%arg0: i32) -> (i32, i32) {
    %c0_i32 = arith.constant 0 : i32
    %c0_i32_0 = arith.constant 0 : i32
    %c0_i32_1 = arith.constant 0 : i32
    return %c0_i32, %c0_i32_0 : i32, i32
  }
  func.func @transform_3(%arg0: i32) -> (i32, i32) {
    %c0_i32 = arith.constant 0 : i32
    %c0_i32_0 = arith.constant 0 : i32
    %c0_i32_1 = arith.constant 0 : i32
    return %c0_i32, %c0_i32_0 : i32, i32
  }
  func.func @transform_4(%arg0: i32) -> (i32, i32) {
    %c0_i32 = arith.constant 0 : i32
    %c0_i32_0 = arith.constant 0 : i32
    %c0_i32_1 = arith.constant 0 : i32
    return %c0_i32, %c0_i32_0 : i32, i32
  }
  func.func @transform_5(%arg0: i32) -> (i32, i32, i32) {
    %c0_i32 = arith.constant 0 : i32
    %c0_i32_0 = arith.constant 0 : i32
    %c0_i32_1 = arith.constant 0 : i32
    return %arg0, %c0_i32, %c0_i32_0 : i32, i32, i32
  }
}

</mosaic_0001>

<bundles_post_ra>
// kernel: tpu_custom_call.1
= control target key start
LH: loop header
LB: loop body
LE: loop exit
PB: predicated region body
PF: predicated region fallthrough
CT: control target
= control target key end

     0   :  { %10 = vsyncpa [#allocation4], 0  ;;  %s2399_s0 = inlined_call_operand.hbm [shape: bf16[2,8,32], index: 0, kind: input, shape index: {}]   ;;  %s2400_s1 = inlined_call_operand.hbm [shape: bf16[32,96], index: 1, kind: input, shape index: {}]   ;;  %s2401_s2 = inlined_call_operand.vmem [shape: f32[1,96], index: 2, kind: input, shape index: {}]   ;;  %s2402_s3 = inlined_call_operand.hbm [shape: bf16[32,32], index: 3, kind: input, shape index: {}]   ;;  %s2403_s4 = inlined_call_operand.vmem [shape: f32[1,32], index: 4, kind: input, shape index: {}]   ;;  %s2404_s5 = inlined_call_operand.hbm [shape: f32[2,8,32], index: 5, kind: output, shape index: {}]  }
   0x1   :  { %12 = vsyncpa [#allocation4 + $0x1], 0 }
   0x2   :  { %13 = vsyncpa [#allocation7], 0 }
   0x3   :  { %14 = vsyncpa [#allocation5], 0 }
   0x4   :  { %16 = vsyncpa [#allocation5 + $0x1], 0  ;;  %s1989_s18 = smov 0   ;;  %s1991_s19 = smov 0  }
   0x5   :  { %s1993_s20 = smov 0   ;;  %s1995_s21 = smov 0  }
   0x6 LB: > { %s2010_s22 = sadd.s32 4294967295, %s1919_s21   ;;  %s1436_s23 = sadd.s32 4294967294, %s1919_s21   ;;  %s1919_s21 = sphi %s1995_s21, %s2424_s21   ;;  %s1915_s20 = sphi %s1993_s20, %s2423_s20   ;;  %s1911_s19 = sphi %s1991_s19, %s2422_s19   ;;  %s1907_s18 = sphi %s1989_s18, %s2421_s18  }
   0x7   : > { %p42_p0 = scmp.ne.s32.totalorder %s1911_s19, %s1907_s18  ;;  %p2405_p1 = scmp.eq.s32.totalorder %s2010_s22, 0 }
   0x8   : > { %p156_p3 = scmp.eq.s32.totalorder %s1436_s23, 1  ;;  %p1437_p5 = scmp.ge.s32.totalorder %s1919_s21, 1 }
   0x9   : > { %p2019_p4 = por %p2405_p1, %p42_p0  ;;  %p163_p7 = scmp.lt.s32.totalorder %s1919_s21, 3 }
   0xa   : > { %p2024_p6 = por %p156_p3, %p42_p0  ;;  %s1921_s27 = smov [#allocation6]  }
   0xb   : > { %s2408_s24 = scalar_select %p2019_p4, 1, 0 }
   0xc   : > { %s2409_s25 = scalar_select %p2024_p6, 1, 0 }
   0xd   : > { %p2029_p8 = pnand %p1437_p5, %p163_p7  ;;  %s175_s28 = sshll.u32 %s1921_s27, 4  ;;  %s2033_s28 = int_to_ptr.vmem [resolvable:$true] %s175_s28 }
   0xe   : > { %s1922_s30 = smov [#allocation8]   ;;  %s1763_s9 = scalar_lea.hbm %s2400_s1, 256 }
   0xf   : > { %p1638_p9 = pneg %p2029_p8  ;;  %s191_s6 = sshll.u32 %s1922_s30, 4  ;;  %s2044_s6 = int_to_ptr.vmem [resolvable:$true] %s191_s6 }
  0x10   : > { %p1764_p12 = scmp.ne.s32.totalorder %s2400_s1, %s1763_s9  ;;  %p1770_p5 = scmp.lt.u32.totalorder %s1763_s9, %s2400_s1 }
  0x11   : > { %p2040_p11 = pnand %p1638_p9, %p2405_p1 }
  0x13   : > { %p1765_p13 = pneg %p2040_p11 }
  0x15   : > { %p1766_p0 = pnand %p1765_p13, %p1764_p12 }
  0x17   : > { %p1767_p3 = pneg %p1766_p0 }
  0x19   : > { %p1772_p7 = pnand %p1770_p5, %p1767_p3 }
  0x1b   : > { %1775 = shalt.err (!%p1772_p7)
}
  0x1c   : > { %s1776_s14 = scalar_lea.vmem %s2033_s28, 256  ;;  %p1784_p2 = scmp.lt.s32.totalorder %s2033_s28, %s2033_s28 }
  0x1d   : > { %p1777_p9 = scmp.ne.s32.totalorder %s2033_s28, %s1776_s14  ;;  %p1785_p12 = scmp.lt.s32.totalorder %s1776_s14, %s1776_s14 }
  0x1f   : > { %p1779_p10 = pnand %p1777_p9, %p1765_p13  ;;  %p1786_p0 = por %p1785_p12, %p1784_p2 }
  0x21   : > { %p1780_p1 = pneg %p1779_p10 }
  0x23   : > { %p1787_p6 = pnand %p1786_p0, %p1780_p1 }
  0x25   : > { %1790 = shalt.err (!%p1787_p6)
}
  0x26   : > { %s1923_s15 = smov 64   ;;  %s1924_s16 = smov 4  }
  0x27   : > { %1641 = dma.hbm_to_vmem [thread:$0]  (!%p2040_p11), %s2400_s1, 256, %s2033_s28, [#allocation7], %s1923_s15, %s1923_s15, %s1924_s16  }
  0x28   : > { %s1791_s7 = scalar_lea.hbm %s2402_s3, 256 }
  0x29   : > { %p1792_p2 = scmp.ne.s32.totalorder %s2402_s3, %s1791_s7  ;;  %p1798_p10 = scmp.lt.u32.totalorder %s1791_s7, %s2402_s3 }
  0x2b   : > { %p1794_p1 = pnand %p1792_p2, %p1765_p13 }
  0x2d   : > { %p1795_p6 = pneg %p1794_p1 }
  0x2f   : > { %p1800_p3 = pnand %p1798_p10, %p1795_p6 }
  0x31   : > { %1803 = shalt.err (!%p1800_p3)
}
  0x32   : > { %s1804_s28 = scalar_lea.vmem %s2044_s6, 256  ;;  %p1812_p12 = scmp.lt.s32.totalorder %s2044_s6, %s2044_s6 }
  0x33   : > { %p1805_p5 = scmp.ne.s32.totalorder %s2044_s6, %s1804_s28  ;;  %p1813_p0 = scmp.lt.s32.totalorder %s1804_s28, %s1804_s28 }
  0x35   : > { %p1807_p7 = pnand %p1805_p5, %p1765_p13  ;;  %p1814_p2 = por %p1813_p0, %p1812_p12 }
  0x37   : > { %p1808_p9 = pneg %p1807_p7 }
  0x39   : > { %p1815_p1 = pnand %p1814_p2, %p1808_p9 }
  0x3b   : > { %1818 = shalt.err (!%p1815_p1)
}
  0x3c   : > { %1644 = dma.hbm_to_vmem [thread:$0]  (!%p2040_p11), %s2402_s3, 256, %s2044_s6, [#allocation7], %s1923_s15, %s1923_s15, %s1924_s16  }
  0x3d   : > { %s2099_s14 = sadd.s32 1, %s1919_s21   ;;  %s29_s29 = sadd.s32 1, %s1915_s20 }
  0x3e   : > { %s26_s17 = ssub.s32 %s1919_s21, %s2099_s14  ;;  %p36_p13 = scmp.ne.s32.totalorder %s1915_s20, %s1911_s19 }
  0x3f   : > { %p27_p6 = scmp.eq.s32.totalorder %s26_s17, 0  ;;  %p37_p10 = scmp.eq.s32.totalorder %s1919_s21, 0 }
  0x40   : > { %p2412_p3 = scmp.eq.s32.totalorder %s2010_s22, 1  ;;  %p1655_p7 = scmp.lt.s32.totalorder %s1919_s21, 2 }
  0x41   : > { %s2115_s27 = scalar_select %p27_p6, %s1915_s20, %s29_s29  }
  0x42   : > { %p2109_p5 = por %p2412_p3, %p36_p13  ;;  %p38_p9 = por %p37_p10, %p36_p13 }
  0x43   : > { %s208_s30 = sand.u32 1, %s1915_s20   ;;  %s1442_s6 = sshll.u32 %s1919_s21, 6 }
  0x44   : > { %s2413_s23 = scalar_select %p2109_p5, 1, 0 }
  0x45   : > { %s1441_s7 = sshll.u32 %s208_s30, 2  ;;  %s2122_s8 = scalar_lea.hbm %s2399_s0, %s1442_s6 }
  0x46   : > { %s212_s9 = scalar_lea.vmem [#allocation3], %s1441_s7  ;;  %p2126_p11 = pnand %p1655_p7, %p38_p9 }
  0x47   : > { %s219_s10 = sshll.u32 %s212_s9, 4  ;;  %s209_s28 = scalar_lea.sflag [#allocation4], %s208_s30  ;;  %s2124_s10 = int_to_ptr.vmem [resolvable:$true] %s219_s10 }
  0x48   : > { %s1819_s12 = scalar_lea.hbm %s2122_s8, 64  ;;  %p1821_p0 = pneg %p2126_p11 }
  0x49   : > { %p1820_p12 = scmp.ne.s32.totalorder %s2122_s8, %s1819_s12  ;;  %s1824_s17 = scalar_lea.hbm %s2399_s0, 128 }
  0x4a   : > { %p1825_p13 = scmp.lt.u32.totalorder %s2122_s8, %s2399_s0  ;;  %p1826_p6 = scmp.lt.u32.totalorder %s1824_s17, %s1819_s12 }
  0x4b   : > { %p1822_p2 = pnand %p1821_p0, %p1820_p12  ;;  %p1828_p3 = scmp.lt.u32.totalorder %s1819_s12, %s2122_s8 }
  0x4c   : > { %p1827_p10 = por %p1826_p6, %p1825_p13 }
  0x4d   : > { %p1823_p1 = pneg %p1822_p2 }
  0x4e   : > { %p1829_p7 = por %p1828_p3, %p1827_p10 }
  0x50   : > { %p1830_p9 = pnand %p1829_p7, %p1823_p1 }
  0x52   : > { %1833 = shalt.err (!%p1830_p9)
}
  0x53   : > { %s1834_s30 = scalar_lea.vmem %s2124_s10, 64  ;;  %s1925_s15 = smov [#allocation3]  }
  0x54   : > { %p1835_p12 = scmp.ne.s32.totalorder %s2124_s10, %s1834_s30  ;;  %s1839_s16 = sshll.u32 %s1925_s15, 4  ;;  %s1840_s16 = int_to_ptr.vmem [resolvable:$false] %s1839_s16 }
  0x55   : > { %s1841_s9 = scalar_lea.vmem %s1840_s16, 128  ;;  %p1842_p4 = scmp.lt.s32.totalorder %s2124_s10, %s1840_s16 }
  0x56   : > { %p1837_p2 = pnand %p1835_p12, %p1821_p0  ;;  %p1843_p13 = scmp.lt.s32.totalorder %s1841_s9, %s1834_s30 }
  0x58   : > { %p1838_p5 = pneg %p1837_p2  ;;  %p1844_p6 = por %p1843_p13, %p1842_p4 }
  0x5a   : > { %p1845_p10 = pnand %p1844_p6, %p1838_p5 }
  0x5c   : > { %1848 = shalt.err (!%p1845_p10)
}
  0x5d   : > { %1648 = dma.hbm_to_vmem [thread:$0]  (!%p2126_p11), %s2122_s8, 64, %s2124_s10, %s209_s28  }
  0x5e   : > { %228 = sbr.rel (%p2029_p8) target bundleno = 1657 (0x679), region = 40  ;;  %s2158_s12 = sand.u32 (!%p2029_p8), 1, %s1911_s19  }
  0x5f   : > { %s1444_s13 = sshll.u32 (!%p2029_p8), %s2158_s12, 2  ;;  %s231_s29 = scalar_lea.sflag (!%p2029_p8), [#allocation4], %s2158_s12 }
  0x60   : > { %s234_s17 = scalar_lea.vmem (!%p2029_p8), [#allocation3], %s1444_s13  ;;  %p2415_p4 = scmp.ne.s32.totalorder (!%p2029_p8), %s2408_s24, 0 }
  0x65   : > { %1894 = dma.done.wait (%p2415_p4), %s231_s29, 64  }
  0x66   : > { %1896 = vsyncadd (%p2415_p4), %s231_s29, 4294967232  ;;  %p2416_p5 = scmp.eq.s32.totalorder %s2010_s22, 0 }
  0x68   : > { %1898 = dma.done.wait (%p2416_p5), [#allocation7], 512   ;;  %p2417_p11 = pmov %p2416_p5 }
  0x69   : > { %v1926_v0 = vmov 0.0   ;;  %vm1927_vm0 = vmmov 0   ;;  %v1727_v1 = vld [vmem:[#allocation6] sm:$0xff]   ;;  %v1728_v2 = vld [vmem:[#allocation6 + $0x8] sm:$0xff]   ;;  %v270_v3 = vld [vmem:[%s234_s17] sm:$0xf] }
  0x6a   : > { %1900 = vsyncadd (%p2417_p11), [#allocation7], 4294966784  ;;  %1514 = vmatprep.subr.bf16.mxu0 %v1926_v0  ;;  %1518 = vmatprep.mubr.msk.bf16.mxu0 %vm1927_vm0, %v1926_v0  ;;  %vm294_vm1 = vcmask 261120   ;;  %v1448_v4 = vld [vmem:[%s2401_s2] ss:$0 sm:$0xff]  ;;  %s1928_s8 = smov 124  }
  0x6b   : > { %1522 = vmatprep.subr.bf16.mxu1 %v1926_v0  ;;  %1524 = vmatprep.mubr.msk.bf16.mxu1 %vm1927_vm0, %v1926_v0  ;;  %s1929_s10 = smov 96   ;;  %s1930_s11 = smov 88   ;;  %vm342_vm2 = vcmask 31744   ;;  %vm389_vm3 = vcmask 64512   ;;  %vm407_vm4 = vcmask 1043456   ;;  %vm566_vm5 = vcmask 64544  }
  0x6c   : > { %1515 = vmatpush3.bf16.msra.mxu0 %v1727_v1  ;;  %s1931_s28 = smov 92   ;;  %s1932_s7 = smov 84   ;;  %vm682_vm6 = vcmask 97344   ;;  %vm798_vm7 = vcmask 130144   ;;  %vm914_vm8 = vcmask 162944   ;;  %vm1030_vm9 = vcmask 195744  }
  0x6d   : > { %1516 = vmatprep.subr.bf16.mxu0 %v1926_v0  ;;  %s1933_s6 = smov 120   ;;  %s1934_s30 = smov 80   ;;  %vm1146_vm10 = vcmask 228544   ;;  %vm1262_vm11 = vcmask 261344  }
  0x6e   : > { %s1935_s15 = smov 116   ;;  %s1936_s16 = smov 76  }
  0x6f   : > { %s1937_s9 = smov 112   ;;  %s1938_s13 = smov 72  }
  0x70   : > { %1517 = vmatpush3.bf16.msra.mxu0 %v1728_v2  ;;  %s1939_s29 = smov 108   ;;  %s1940_s17 = smov 68  }
  0x71   : > { %1528 = vmatprep.subr.bf16.mxu0 %v1926_v0  ;;  %s1941_s24 = smov 104   ;;  %s1942_s26 = smov 100  }
  0x72   : > { %p2418_p0 = scmp.ne.s32.totalorder %s2413_s23, 0 }
  0x73   : > { %1519 = vmatmul.mubr.msk.bf16.vlgmr.msra.gmra.mrb[0].mxu0 %vm294_vm1, %v270_v3 }
  0x74   : > { %1530 = vmatprep.mubr.msk.bf16.mxu0 %vm1927_vm0, %v1926_v0 }
 0x146   : > { %v332_v5 = vpop.f32.mrb[0].mxu0 }
 0x147   : > { %v333_v6 = vadd.f32 %v1448_v4, %v332_v5  ;;  %v1520_v7 = vpop.f32.mrb[1].mxu0 }
 0x148   : > { %v335_v8 = vpop.f32.mrb[2].mxu0 }
 0x149   : > { %v2184_v9 = vpack.c.bf16 %v333_v6, %v333_v6  ;;  %v1521_v10 = vpop.f32.mrb[3].mxu0 }
 0x14b   : > { %452 = vrot.lane.b32.xlu1 %v2184_v9, %s1928_s8  ;;  %340 = vrot.lane.b32.xlu0 %v2184_v9, %s1929_s10  ;;  %s1943_s8 = smov 60   ;;  %s1944_s10 = smov 64  }
 0x14f   : > { %570 = vrot.lane.b32.xlu1 %v2184_v9, %s1930_s11  ;;  %454 = vrot.lane.b32.xlu0 %v2184_v9, %s1931_s28  ;;  %s1945_s11 = smov 56   ;;  %s1946_s28 = smov 52  }
 0x153   : > { %686 = vrot.lane.b32.xlu1 %v2184_v9, %s1932_s7  ;;  %568 = vrot.lane.b32.xlu0 %v2184_v9, %s1933_s6  ;;  %s1947_s7 = smov 44   ;;  %s1948_s6 = smov 40  }
 0x157   : > { %802 = vrot.lane.b32.xlu1 %v2184_v9, %s1934_s30  ;;  %684 = vrot.lane.b32.xlu0 %v2184_v9, %s1935_s15  ;;  %s1949_s30 = smov 36   ;;  %s1950_s15 = smov 48  }
 0x15b   : > { %918 = vrot.lane.b32.xlu1 %v2184_v9, %s1936_s16  ;;  %800 = vrot.lane.b32.xlu0 %v2184_v9, %s1937_s9  ;;  %s1951_s16 = smov 4   ;;  %s1952_s9 = smov 8  }
 0x15f   : > { %1034 = vrot.lane.b32.xlu1 %v2184_v9, %s1938_s13  ;;  %916 = vrot.lane.b32.xlu0 %v2184_v9, %s1939_s29  ;;  %s1953_s13 = smov 12   ;;  %s1954_s29 = smov 16  }
 0x163   : > { %1150 = vrot.lane.b32.xlu1 %v2184_v9, %s1940_s17  ;;  %1032 = vrot.lane.b32.xlu0 %v2184_v9, %s1941_s24  ;;  %s1955_s17 = smov 20   ;;  %s1956_s24 = smov 24  }
 0x167   : > { %1148 = vrot.lane.b32.xlu0 %v2184_v9, %s1942_s26  ;;  %s1957_s26 = smov 28  }
 0x1bd   : > { %v341_v11 = vpop.permute.xlu0 %340  ;;  %v453_v14 = vpop.permute.xlu1 %452 }
 0x1be   : > { %v347_v12 = vsel %vm342_vm2, %v341_v11, 0 }
 0x1bf   : > { %1523 = vmatpush3.bf16.xpose.msra.mxu1 %v347_v12 }
 0x1c0   : > { %1534 = vmatprep.subr.bf16.mxu1 %v1926_v0 }
 0x1c1   : > { %v455_v13 = vpop.permute.xlu0 %454  ;;  %v571_v16 = vpop.permute.xlu1 %570 }
 0x1c2   : > { %v460_v15 = vsel %vm342_vm2, %v455_v13, 0  ;;  %v576_v17 = vsel %vm342_vm2, %v571_v16, 0 }
 0x1c5   : > { %v687_v18 = vpop.permute.xlu1 %686  ;;  %v569_v19 = vpop.permute.xlu0 %568 }
 0x1c6   : > { %1525 = vmatmul.mubr.msk.bf16.vlgmr.msra.gmra.mrb[0].mxu1 %vm342_vm2, %v2184_v9  ;;  %v692_v20 = vsel %vm342_vm2, %v687_v18, 0 }
 0x1c7   : > { %1535 = vmatpush3.bf16.xpose.msra.mxu1 %v460_v15  ;;  %1536 = vmatprep.mubr.msk.bf16.mxu1 %vm1927_vm0, %v1926_v0 }
 0x1c8   : > { %1546 = vmatprep.subr.bf16.mxu1 %v1926_v0 }
 0x1c9   : > { %v803_v21 = vpop.permute.xlu1 %802  ;;  %v685_v22 = vpop.permute.xlu0 %684 }
 0x1ca   : > { %v808_v23 = vsel %vm342_vm2, %v803_v21, 0 }
 0x1cd   : > { %v919_v24 = vpop.permute.xlu1 %918  ;;  %v801_v25 = vpop.permute.xlu0 %800 }
 0x1ce   : > { %1537 = vmatmul.mubr.msk.bf16.vlgmr.msra.gmra.mrb[4].mxu1 %vm342_vm2, %v453_v14  ;;  %v924_v26 = vsel %vm342_vm2, %v919_v24, 0 }
 0x1cf   : > { %1547 = vmatpush3.bf16.xpose.msra.mxu1 %v576_v17  ;;  %1548 = vmatprep.mubr.msk.bf16.mxu1 %vm1927_vm0, %v1926_v0 }
 0x1d0   : > { %1558 = vmatprep.subr.bf16.mxu1 %v1926_v0 }
 0x1d1   : > { %v1035_v27 = vpop.permute.xlu1 %1034  ;;  %v917_v28 = vpop.permute.xlu0 %916 }
 0x1d2   : > { %v1040_v29 = vsel %vm342_vm2, %v1035_v27, 0 }
 0x1d5   : > { %v1151_v30 = vpop.permute.xlu1 %1150  ;;  %v1033_v31 = vpop.permute.xlu0 %1032 }
 0x1d6   : > { %1549 = vmatmul.mubr.msk.bf16.vlgmr.msra.gmra.mrb[8].mxu1 %vm342_vm2, %v569_v19  ;;  %v1156_v32 = vsel %vm342_vm2, %v1151_v30, 0 }
 0x1d7   : > { %1559 = vmatpush3.bf16.xpose.msra.mxu1 %v692_v20  ;;  %1560 = vmatprep.mubr.msk.bf16.mxu1 %vm1927_vm0, %v1926_v0 }
 0x1d8   : > { %1570 = vmatprep.subr.bf16.mxu1 %v1926_v0 }
 0x1d9   : > { %v1149_v33 = vpop.permute.xlu0 %1148 }
 0x1de   : > { %1561 = vmatmul.mubr.msk.bf16.vlgmr.msra.gmra.mrb[12].mxu1 %vm342_vm2, %v685_v22 }
 0x1df   : > { %1571 = vmatpush3.bf16.xpose.msra.mxu1 %v808_v23  ;;  %1572 = vmatprep.mubr.msk.bf16.mxu1 %vm1927_vm0, %v1926_v0 }
 0x1e0   : > { %1582 = vmatprep.subr.bf16.mxu1 %v1926_v0 }
 0x1e6   : > { %1573 = vmatmul.mubr.msk.bf16.vlgmr.msra.gmra.mrb[16].mxu1 %vm342_vm2, %v801_v25 }
 0x1e7   : > { %1583 = vmatpush3.bf16.xpose.msra.mxu1 %v924_v26  ;;  %1584 = vmatprep.mubr.msk.bf16.mxu1 %vm1927_vm0, %v1926_v0 }
 0x1e8   : > { %1594 = vmatprep.subr.bf16.mxu1 %v1926_v0 }
 0x1ee   : > { %1585 = vmatmul.mubr.msk.bf16.vlgmr.msra.gmra.mrb[20].mxu1 %vm342_vm2, %v917_v28 }
 0x1ef   : > { %1595 = vmatpush3.bf16.xpose.msra.mxu1 %v1040_v29  ;;  %1596 = vmatprep.mubr.msk.bf16.mxu1 %vm1927_vm0, %v1926_v0 }
 0x1f0   : > { %1606 = vmatprep.subr.bf16.mxu1 %v1926_v0 }
 0x1f6   : > { %1597 = vmatmul.mubr.msk.bf16.vlgmr.msra.gmra.mrb[24].mxu1 %vm342_vm2, %v1033_v31 }
 0x1f7   : > { %1607 = vmatpush3.bf16.xpose.msra.mxu1 %v1156_v32  ;;  %1608 = vmatprep.mubr.msk.bf16.mxu1 %vm1927_vm0, %v1926_v0 }
 0x1f8   : > { %1618 = vmatprep.subr.bf16.mxu1 %v1926_v0 }
 0x1fe   : > { %1609 = vmatmul.mubr.msk.bf16.vlgmr.msra.gmra.mrb[28].mxu1 %vm342_vm2, %v1149_v33 }
 0x1ff   : > { %1622 = vmatprep.mubr.msk.bf16.mxu1 %vm1927_vm0, %v1926_v0 }
 0x299   : > { %v383_v34 = vpop.f32.mrb[0].mxu1 }
 0x29a   : > { %v1526_v35 = vpop.f32.mrb[1].mxu1  ;;  %v390_v36 = vsel %vm389_vm3, %v383_v34, -inf }
 0x29b   : > { %391 = vmax.xlane.f32.xlu1 %v390_v36  ;;  %v386_v37 = vpop.f32.mrb[2].mxu1 }
 0x29c   : > { %v1527_v38 = vpop.f32.mrb[3].mxu1 }
 0x2a1   : > { %v496_v39 = vpop.f32.mrb[4].mxu1 }
 0x2a2   : > { %v1538_v40 = vpop.f32.mrb[5].mxu1  ;;  %v502_v41 = vsel %vm389_vm3, %v496_v39, -inf }
 0x2a3   : > { %503 = vmax.xlane.f32.xlu0 %v502_v41  ;;  %v499_v42 = vpop.f32.mrb[6].mxu1 }
 0x2a4   : > { %v1539_v43 = vpop.f32.mrb[7].mxu1 }
 0x2a9   : > { %v612_v44 = vpop.f32.mrb[8].mxu1 }
 0x2aa   : > { %v1550_v45 = vpop.f32.mrb[9].mxu1  ;;  %v618_v46 = vsel %vm389_vm3, %v612_v44, -inf }
 0x2ab   : > { %619 = vmax.xlane.f32.xlu0 %v618_v46  ;;  %v615_v47 = vpop.f32.mrb[10].mxu1 }
 0x2ac   : > { %v1551_v48 = vpop.f32.mrb[11].mxu1 }
 0x2b1   : > { %v728_v49 = vpop.f32.mrb[12].mxu1 }
 0x2b2   : > { %v1562_v50 = vpop.f32.mrb[13].mxu1  ;;  %v734_v51 = vsel %vm389_vm3, %v728_v49, -inf }
 0x2b3   : > { %735 = vmax.xlane.f32.xlu1 %v734_v51  ;;  %v731_v52 = vpop.f32.mrb[14].mxu1 }
 0x2b4   : > { %v1563_v53 = vpop.f32.mrb[15].mxu1 }
 0x2b9   : > { %v844_v54 = vpop.f32.mrb[16].mxu1 }
 0x2ba   : > { %v1574_v55 = vpop.f32.mrb[17].mxu1  ;;  %v850_v56 = vsel %vm389_vm3, %v844_v54, -inf }
 0x2bb   : > { %851 = vmax.xlane.f32.xlu0 %v850_v56  ;;  %v847_v57 = vpop.f32.mrb[18].mxu1 }
 0x2bc   : > { %v1575_v58 = vpop.f32.mrb[19].mxu1 }
 0x2c1   : > { %v2247_v59 = vpop.f32.mrb[20].mxu1 }
 0x2c2   : > { %v1586_v60 = vpop.f32.mrb[21].mxu1  ;;  %v966_v61 = vsel %vm389_vm3, %v2247_v59, -inf }
 0x2c3   : > { %967 = vmax.xlane.f32.xlu1 %v966_v61  ;;  %v963_v62 = vpop.f32.mrb[22].mxu1 }
 0x2c4   : > { %v1587_v63 = vpop.f32.mrb[23].mxu1 }
 0x2c9   : > { %v1076_v1 = vpop.f32.mrb[24].mxu1 }
 0x2ca   : > { %v1598_v2 = vpop.f32.mrb[25].mxu1  ;;  %v1082_v3 = vsel %vm389_vm3, %v1076_v1, -inf }
 0x2cb   : > { %1083 = vmax.xlane.f32.xlu0 %v1082_v3  ;;  %v1079_v4 = vpop.f32.mrb[26].mxu1 }
 0x2cc   : > { %v1599_v5 = vpop.f32.mrb[27].mxu1 }
 0x2d1   : > { %v2252_v6 = vpop.f32.mrb[28].mxu1 }
 0x2d2   : > { %v1610_v7 = vpop.f32.mrb[29].mxu1  ;;  %v1198_v11 = vsel %vm389_vm3, %v2252_v6, -inf }
 0x2d3   : > { %v1195_v8 = vpop.f32.mrb[30].mxu1 }
 0x2d4   : > { %514 = vrot.lane.b32.xlu1 %v2184_v9, %s1943_s8  ;;  %v1611_v10 = vpop.f32.mrb[31].mxu1  ;;  %s1447_s8 = sshll.u32 %s2158_s12, 3 }
 0x2e1   : > { %402 = vrot.lane.b32.xlu0 %v2184_v9, %s1944_s10 }
 0x2f8   : > { %1199 = vmax.xlane.f32.xlu1 %v1198_v11 }
 0x309   : > { %630 = vrot.lane.b32.xlu1 %v2184_v9, %s1945_s11 }
 0x328   : > { %v392_v12 = vpop.xlane.xlu1 %391 }
 0x329   : > { %v393_v13 = vsub.f32 %v383_v34, %v392_v12 }
 0x32b   : > { %v394_v14 = vmul.f32 1.442695, %v393_v13 }
 0x32d   : > { %1731 = vpow2.f32 %v394_v14 }
 0x330   : > { %v504_v15 = vpop.xlane.xlu0 %503 }
 0x331   : > { %v505_v16 = vsub.f32 %v496_v39, %v504_v15 }
 0x333   : > { %v506_v17 = vmul.f32 1.442695, %v505_v16 }
 0x335   : > { %1733 = vpow2.f32 %v506_v17 }
 0x337   : > { %v2259_v18 = vpop.eup %1731 }
 0x338   : > { %v620_v19 = vpop.xlane.xlu0 %619  ;;  %v396_v20 = vsel %vm389_vm3, %v2259_v18, 0.0 }
 0x339   : > { %v621_v21 = vsub.f32 %v612_v44, %v620_v19  ;;  %397 = vadd.xlane.f32.xlu0 %v396_v20 }
 0x33b   : > { %v622_v22 = vmul.f32 1.442695, %v621_v21 }
 0x33d   : > { %1735 = vpow2.f32 %v622_v22 }
 0x33f   : > { %v2263_v23 = vpop.eup %1733 }
 0x340   : > { %v736_v24 = vpop.xlane.xlu1 %735  ;;  %v508_v25 = vsel %vm389_vm3, %v2263_v23, 0.0 }
 0x341   : > { %v737_v26 = vsub.f32 %v728_v49, %v736_v24  ;;  %509 = vadd.xlane.f32.xlu1 %v508_v25 }
 0x343   : > { %v738_v27 = vmul.f32 1.442695, %v737_v26 }
 0x345   : > { %1737 = vpow2.f32 %v738_v27 }
 0x347   : > { %v2267_v28 = vpop.eup %1735 }
 0x348   : > { %v852_v29 = vpop.xlane.xlu0 %851  ;;  %v624_v30 = vsel %vm389_vm3, %v2267_v28, 0.0 }
 0x349   : > { %v853_v31 = vsub.f32 %v844_v54, %v852_v29  ;;  %625 = vadd.xlane.f32.xlu0 %v624_v30 }
 0x34b   : > { %v854_v32 = vmul.f32 1.442695, %v853_v31 }
 0x34d   : > { %1739 = vpow2.f32 %v854_v32 }
 0x34f   : > { %v2271_v33 = vpop.eup %1737 }
 0x350   : > { %v740_v34 = vsel %vm389_vm3, %v2271_v33, 0.0  ;;  %v968_v42 = vpop.xlane.xlu1 %967 }
 0x351   : > { %741 = vadd.xlane.f32.xlu1 %v740_v34  ;;  %v969_v44 = vsub.f32 %v2247_v59, %v968_v42 }
 0x353   : > { %v970_v46 = vmul.f32 1.442695, %v969_v44 }
 0x354   : > { %v515_v49 = vpop.permute.xlu1 %514 }
 0x355   : > { %v520_v61 = vsel %vm407_vm4, %v515_v49, 0 }
 0x357   : > { %v2275_v35 = vpop.eup %1739 }
 0x358   : > { %v1084_v36 = vpop.xlane.xlu0 %1083  ;;  %v856_v37 = vsel %vm389_vm3, %v2275_v35, 0.0 }
 0x359   : > { %v1085_v38 = vsub.f32 %v1076_v1, %v1084_v36  ;;  %857 = vadd.xlane.f32.xlu1 %v856_v37 }
 0x35b   : > { %v1086_v39 = vmul.f32 1.442695, %v1085_v38 }
 0x35c   : > { %v403_v40 = vpop.permute.xlu0 %402 }
 0x35d   : > { %1741 = vpow2.f32 %v1086_v39  ;;  %v409_v41 = vsel %vm407_vm4, %v403_v40, 0 }
 0x35e   : > { %1529 = vmatpush3.bf16.msra.mxu0 %v409_v41  ;;  %1743 = vpow2.f32 %v970_v46 }
 0x35f   : > { %746 = vrot.lane.b32.xlu0 %v2184_v9, %s1946_s28  ;;  %1540 = vmatprep.subr.bf16.mxu0 %v1926_v0  ;;  %s1473_s28 = sshll.u32 %s2010_s22, 7  ;;  %s1334_s22 = scalar_lea.sflag [#allocation5], %s2158_s12 }
 0x367   : > { %v2282_v43 = vpop.eup %1741 }
 0x368   : > { %v1088_v45 = vsel %vm389_vm3, %v2282_v43, 0.0  ;;  %v2287_v47 = vpop.eup %1743 }
 0x369   : > { %1089 = vadd.xlane.f32.xlu1 %v1088_v45  ;;  %v972_v48 = vsel %vm389_vm3, %v2287_v47, 0.0 }
 0x37e   : > { %973 = vadd.xlane.f32.xlu0 %v972_v48 }
 0x385   : > { %v1200_v50 = vpop.xlane.xlu1 %1199 }
 0x386   : > { %v1201_v51 = vsub.f32 %v2252_v6, %v1200_v50 }
 0x388   : > { %v1202_v52 = vmul.f32 1.442695, %v1201_v51 }
 0x389   : > { %v631_v56 = vpop.permute.xlu1 %630 }
 0x38a   : > { %1745 = vpow2.f32 %v1202_v52  ;;  %v636_v2 = vsel %vm407_vm4, %v631_v56, 0 }
 0x394   : > { %v2292_v53 = vpop.eup %1745  ;;  %978 = vrot.lane.b32.xlu0 %v2184_v9, %s1947_s7  ;;  %s268_s7 = scalar_lea.vmem [#allocation9], %s1447_s8 }
 0x395   : > { %v1204_v54 = vsel %vm389_vm3, %v2292_v53, 0.0 }
 0x396   : > { %1205 = vadd.xlane.f32.xlu1 %v1204_v54 }
 0x398   : > { %1094 = vrot.lane.b32.xlu0 %v2184_v9, %s1948_s6  ;;  %s1347_s6 = sshll.u32 %s268_s7, 4  ;;  %s2356_s6 = int_to_ptr.vmem [resolvable:$true] %s1347_s6 }
 0x39c   : > { %1210 = vrot.lane.b32.xlu0 %v2184_v9, %s1949_s30 }
 0x3a7   : > { %862 = vrot.lane.b32.xlu1 %v2184_v9, %s1950_s15 }
 0x3c6   : > { %v398_v55 = vpop.xlane.xlu0 %397 }
 0x3c7   : > { %1747 = vrcp.f32 %v398_v55 }
 0x3ce   : > { %v510_v57 = vpop.xlane.xlu1 %509 }
 0x3cf   : > { %1749 = vrcp.f32 %v510_v57 }
 0x3d1   : > { %v1748_v58 = vpop.eup %1747 }
 0x3d2   : > { %v400_v59 = vmul.f32 %v1748_v58, %v2259_v18 }
 0x3d4   : > { %v401_v60 = vpack.c.bf16 %v400_v59, %v400_v59 }
 0x3d6   : > { %1531 = vmatmul.mubr.msk.bf16.vlgmr.msra.gmra.mrb[4].mxu0 %vm389_vm3, %v401_v60  ;;  %v626_v62 = vpop.xlane.xlu0 %625 }
 0x3d7   : > { %1541 = vmatpush3.bf16.msra.mxu0 %v520_v61  ;;  %1751 = vrcp.f32 %v626_v62  ;;  %1542 = vmatprep.mubr.msk.bf16.mxu0 %vm1927_vm0, %v1926_v0  ;;  %v1729_v61 = vld [vmem:[#allocation8] sm:$0xff]   ;;  %v1730_v62 = vld [vmem:[#allocation8 + $0x8] sm:$0xff]  }
 0x3d8   : > { %1552 = vmatprep.subr.bf16.mxu0 %v1926_v0  ;;  %1619 = vmatpush3.bf16.msra.mxu1 %v1729_v61 }
 0x3d9   : > { %v1750_v9 = vpop.eup %1749  ;;  %1620 = vmatprep.subr.bf16.mxu1 %v1926_v0 }
 0x3da   : > { %v512_v63 = vmul.f32 %v1750_v9, %v2263_v23  ;;  %v747_v6 = vpop.permute.xlu0 %746 }
 0x3db   : > { %v752_v8 = vsel %vm407_vm4, %v747_v6, 0 }
 0x3dc   : > { %v513_v1 = vpack.c.bf16 %v512_v63, %v512_v63  ;;  %1621 = vmatpush3.bf16.msra.mxu1 %v1730_v62 }
 0x3de   : > { %v742_v3 = vpop.xlane.xlu1 %741  ;;  %1543 = vmatmul.mubr.msk.bf16.vlgmr.msra.gmra.mrb[8].mxu0 %vm389_vm3, %v513_v1 }
 0x3df   : > { %1753 = vrcp.f32 %v742_v3  ;;  %1553 = vmatpush3.bf16.msra.mxu0 %v636_v2  ;;  %1554 = vmatprep.mubr.msk.bf16.mxu0 %vm1927_vm0, %v1926_v0 }
 0x3e0   : > { %1564 = vmatprep.subr.bf16.mxu0 %v1926_v0 }
 0x3e1   : > { %v1752_v4 = vpop.eup %1751 }
 0x3e2   : > { %v628_v5 = vmul.f32 %v1752_v4, %v2267_v28 }
 0x3e4   : > { %v629_v7 = vpack.c.bf16 %v628_v5, %v628_v5 }
 0x3e6   : > { %1555 = vmatmul.mubr.msk.bf16.vlgmr.msra.gmra.mrb[12].mxu0 %vm389_vm3, %v629_v7  ;;  %v858_v13 = vpop.xlane.xlu1 %857 }
 0x3e7   : > { %1565 = vmatpush3.bf16.msra.mxu0 %v752_v8  ;;  %1566 = vmatprep.mubr.msk.bf16.mxu0 %vm1927_vm0, %v1926_v0  ;;  %1755 = vrcp.f32 %v858_v13 }
 0x3e8   : > { %1576 = vmatprep.subr.bf16.mxu0 %v1926_v0 }
 0x3e9   : > { %v1754_v10 = vpop.eup %1753 }
 0x3ea   : > { %v744_v11 = vmul.f32 %v1754_v10, %v2271_v33 }
 0x3ec   : > { %v745_v12 = vpack.c.bf16 %v744_v11, %v744_v11 }
 0x3ee   : > { %1567 = vmatmul.mubr.msk.bf16.vlgmr.msra.gmra.mrb[16].mxu0 %vm389_vm3, %v745_v12 }
 0x3ef   : > { %1578 = vmatprep.mubr.msk.bf16.mxu0 %vm1927_vm0, %v1926_v0 }
 0x3f1   : > { %v1756_v16 = vpop.eup %1755 }
 0x3f2   : > { %v860_v18 = vmul.f32 %v1756_v16, %v2275_v35  ;;  %v1468_v16 = vld [vmem:[%s2403_s4] ss:$0 sm:$0xff] }
 0x3f4   : > { %v861_v22 = vpack.c.bf16 %v860_v18, %v860_v18 }
 0x3f6   : > { %v1090_v15 = vpop.xlane.xlu1 %1089 }
 0x40b   : > { %v974_v14 = vpop.xlane.xlu0 %973 }
 0x40c   : > { %1757 = vrcp.f32 %v974_v14 }
 0x40d   : > { %1759 = vrcp.f32 %v1090_v15 }
 0x40f   : > { %v979_v21 = vpop.permute.xlu0 %978 }
 0x410   : > { %v984_v24 = vsel %vm407_vm4, %v979_v21, 0 }
 0x413   : > { %v1095_v26 = vpop.permute.xlu0 %1094 }
 0x414   : > { %v1100_v29 = vsel %vm407_vm4, %v1095_v26, 0 }
 0x416   : > { %v1758_v23 = vpop.eup %1757 }
 0x417   : > { %v976_v25 = vmul.f32 %v1758_v23, %v2287_v47  ;;  %v1760_v28 = vpop.eup %1759  ;;  %v1211_v31 = vpop.permute.xlu0 %1210 }
 0x418   : > { %v1092_v30 = vmul.f32 %v1760_v28, %v2282_v43  ;;  %v1216_v34 = vsel %vm407_vm4, %v1211_v31, 0 }
 0x419   : > { %v977_v27 = vpack.c.bf16 %v976_v25, %v976_v25 }
 0x41a   : > { %v1093_v32 = vpack.c.bf16 %v1092_v30, %v1092_v30 }
 0x423   : > { %v1206_v17 = vpop.xlane.xlu1 %1205 }
 0x424   : > { %1761 = vrcp.f32 %v1206_v17 }
 0x427   : > { %v863_v19 = vpop.permute.xlu1 %862 }
 0x428   : > { %v868_v20 = vsel %vm407_vm4, %v863_v19, 0 }
 0x429   : > { %1577 = vmatpush3.bf16.msra.mxu0 %v868_v20 }
 0x42a   : > { %1588 = vmatprep.subr.bf16.mxu0 %v1926_v0 }
 0x42c   : > { %1579 = vmatmul.mubr.msk.bf16.vlgmr.msra.gmra.mrb[20].mxu0 %vm389_vm3, %v861_v22 }
 0x42d   : > { %1589 = vmatpush3.bf16.msra.mxu0 %v984_v24  ;;  %1590 = vmatprep.mubr.msk.bf16.mxu0 %vm1927_vm0, %v1926_v0 }
 0x42e   : > { %1600 = vmatprep.subr.bf16.mxu0 %v1926_v0  ;;  %v1762_v33 = vpop.eup %1761 }
 0x42f   : > { %v1208_v35 = vmul.f32 %v1762_v33, %v2292_v53 }
 0x431   : > { %v1209_v36 = vpack.c.bf16 %v1208_v35, %v1208_v35 }
 0x434   : > { %1591 = vmatmul.mubr.msk.bf16.vlgmr.msra.gmra.mrb[24].mxu0 %vm389_vm3, %v977_v27 }
 0x435   : > { %1601 = vmatpush3.bf16.msra.mxu0 %v1100_v29  ;;  %1602 = vmatprep.mubr.msk.bf16.mxu0 %vm1927_vm0, %v1926_v0 }
 0x436   : > { %1612 = vmatprep.subr.bf16.mxu0 %v1926_v0 }
 0x43c   : > { %1603 = vmatmul.mubr.msk.bf16.vlgmr.msra.gmra.mrb[28].mxu0 %vm389_vm3, %v1093_v32 }
 0x43d   : > { %1613 = vmatpush3.bf16.msra.mxu0 %v1216_v34  ;;  %1614 = vmatprep.mubr.msk.bf16.mxu0 %vm1927_vm0, %v1926_v0 }
 0x444   : > { %1615 = vmatmul.mubr.msk.bf16.vlgmr.msra.gmra.mrb[32].mxu0 %vm389_vm3, %v1209_v36 }
 0x4a9   : > { %v445_v37 = vpop.f32.mrb[4].mxu0 }
 0x4aa   : > { %451 = vst.msk [vmem:[#allocation2] sm:$0xff] %vm342_vm2, %v445_v37  ;;  %v1532_v38 = vpop.f32.mrb[5].mxu0 }
 0x4ab   : > { %v448_v39 = vpop.f32.mrb[6].mxu0 }
 0x4ac   : > { %v1533_v40 = vpop.f32.mrb[7].mxu0 }
 0x4b1   : > { %v556_v41 = vpop.f32.mrb[8].mxu0 }
 0x4b2   : > { %563 = vrot.lane.b32.xlu1 %v556_v41, %s1951_s16  ;;  %v1544_v42 = vpop.f32.mrb[9].mxu0  ;;  %s2354_s16 = scalar_lea.hbm %s2404_s5, %s1473_s28 }
 0x4b3   : > { %v559_v43 = vpop.f32.mrb[10].mxu0 }
 0x4b4   : > { %v1545_v44 = vpop.f32.mrb[11].mxu0 }
 0x4b9   : > { %v672_v45 = vpop.f32.mrb[12].mxu0 }
 0x4ba   : > { %679 = vrot.lane.b32.xlu0 %v672_v45, %s1952_s9  ;;  %v1556_v46 = vpop.f32.mrb[13].mxu0  ;;  %s1849_s9 = scalar_lea.vmem %s2356_s6, 128 }
 0x4bb   : > { %v675_v47 = vpop.f32.mrb[14].mxu0  ;;  %p1850_p8 = scmp.ne.s32.totalorder %s2356_s6, %s1849_s9 }
 0x4bc   : > { %v1557_v48 = vpop.f32.mrb[15].mxu0 }
 0x4bd   : > { %p1851_p1 = pnand %p1850_p8, %p2418_p0 }
 0x4bf   : > { %p1852_p3 = pneg %p1851_p1 }
 0x4c1   : > { %v788_v49 = vpop.f32.mrb[16].mxu0 }
 0x4c2   : > { %795 = vrot.lane.b32.xlu1 %v788_v49, %s1953_s13  ;;  %v1568_v50 = vpop.f32.mrb[17].mxu0  ;;  %s1958_s13 = smov [#allocation9]  }
 0x4c3   : > { %v791_v51 = vpop.f32.mrb[18].mxu0 }
 0x4c4   : > { %v1569_v52 = vpop.f32.mrb[19].mxu0 }
 0x4ff   : > { %v904_v53 = vpop.f32.mrb[20].mxu0 }
 0x500   : > { %911 = vrot.lane.b32.xlu0 %v904_v53, %s1954_s29  ;;  %v1580_v54 = vpop.f32.mrb[21].mxu0  ;;  %s1853_s29 = sshll.u32 %s1958_s13, 4  ;;  %s1854_s29 = int_to_ptr.vmem [resolvable:$false] %s1853_s29 }
 0x501   : > { %v907_v55 = vpop.f32.mrb[22].mxu0  ;;  %p1856_p7 = scmp.lt.s32.totalorder %s2356_s6, %s1854_s29 }
 0x502   : > { %v1581_v56 = vpop.f32.mrb[23].mxu0 }
 0x507   : > { %v1020_v57 = vpop.f32.mrb[24].mxu0 }
 0x508   : > { %1027 = vrot.lane.b32.xlu1 %v1020_v57, %s1955_s17  ;;  %v1592_v58 = vpop.f32.mrb[25].mxu0  ;;  %s1855_s17 = scalar_lea.vmem %s1854_s29, 256 }
 0x509   : > { %v1023_v59 = vpop.f32.mrb[26].mxu0  ;;  %p1857_p9 = scmp.lt.s32.totalorder %s1855_s17, %s1849_s9 }
 0x50a   : > { %v1593_v60 = vpop.f32.mrb[27].mxu0 }
 0x50b   : > { %p1858_p12 = por %p1857_p9, %p1856_p7 }
 0x50d   : > { %p1859_p2 = pnand %p1858_p12, %p1852_p3 }
 0x50f   : > { %v1136_v9 = vpop.f32.mrb[28].mxu0 }
 0x510   : > { %1143 = vrot.lane.b32.xlu0 %v1136_v9, %s1956_s24  ;;  %v1604_v63 = vpop.f32.mrb[29].mxu0 }
 0x511   : > { %v1139_v1 = vpop.f32.mrb[30].mxu0 }
 0x512   : > { %v1605_v2 = vpop.f32.mrb[31].mxu0 }
 0x517   : > { %v1252_v3 = vpop.f32.mrb[32].mxu0 }
 0x518   : > { %1259 = vrot.lane.b32.xlu1 %v1252_v3, %s1957_s26  ;;  %v1616_v4 = vpop.f32.mrb[33].mxu0 }
 0x519   : > { %v1255_v5 = vpop.f32.mrb[34].mxu0 }
 0x51a   : > { %v1617_v6 = vpop.f32.mrb[35].mxu0 }
 0x524   : > { %v564_v7 = vpop.permute.xlu1 %563 }
 0x525   : > { %567 = vst.msk [vmem:[#allocation2] sm:$0xff] %vm566_vm5, %v564_v7 }
 0x52c   : > { %v680_v8 = vpop.permute.xlu0 %679 }
 0x52d   : > { %683 = vst.msk [vmem:[#allocation2] sm:$0xff] %vm682_vm6, %v680_v8 }
 0x534   : > { %v796_v0 = vpop.permute.xlu1 %795 }
 0x535   : > { %799 = vst.msk [vmem:[#allocation2] sm:$0xff] %vm798_vm7, %v796_v0 }
 0x572   : > { %v912_v10 = vpop.permute.xlu0 %911 }
 0x573   : > { %915 = vst.msk [vmem:[#allocation2] sm:$0xff] %vm914_vm8, %v912_v10 }
 0x57a   : > { %v1028_v11 = vpop.permute.xlu1 %1027 }
 0x57b   : > { %1031 = vst.msk [vmem:[#allocation2] sm:$0xff] %vm1030_vm9, %v1028_v11 }
 0x582   : > { %v1144_v12 = vpop.permute.xlu0 %1143 }
 0x583   : > { %1147 = vst.msk [vmem:[#allocation2] sm:$0xff] %vm1146_vm10, %v1144_v12 }
 0x58a   : > { %v1260_v13 = vpop.permute.xlu1 %1259 }
 0x58b   : > { %1263 = vst.msk [vmem:[#allocation2] sm:$0xff] %vm1262_vm11, %v1260_v13 }
 0x592   : > { %v1264_v14 = vld [vmem:[#allocation2] sm:$0xff] }
 0x593   : > { %v1265_v15 = vpack.c.bf16 %v1264_v14, %v1264_v14 }
 0x595   : > { %1623 = vmatmul.mubr.msk.bf16.vlgmr.msra.gmra.mrb[32].mxu1 %vm294_vm1, %v1265_v15 }
 0x668   : > { %v1326_v17 = vpop.f32.mrb[32].mxu1 }
 0x669   : > { %v1327_v18 = vadd.f32 %v1468_v16, %v1326_v17  ;;  %v1624_v19 = vpop.f32.mrb[33].mxu1 }
 0x66a   : > { %v1329_v20 = vpop.f32.mrb[34].mxu1 }
 0x66b   : > { %v1625_v21 = vpop.f32.mrb[35].mxu1  ;;  %1332 = vst.msk [vmem:[%s268_s7] sm:$0xff] %vm294_vm1, %v1327_v18 }
 0x66c   : > { %1862 = shalt.err (!%p1859_p2)
}
 0x66d   : > { %s1863_s12 = scalar_lea.hbm %s2354_s16, 128  ;;  %s1867_s8 = scalar_lea.hbm %s2404_s5, 256 }
 0x66e   : > { %p1864_p13 = scmp.ne.s32.totalorder %s2354_s16, %s1863_s12  ;;  %p1868_p4 = scmp.lt.u32.totalorder %s2354_s16, %s2404_s5 }
 0x66f   : > { %p1869_p5 = scmp.lt.u32.totalorder %s1867_s8, %s1863_s12  ;;  %p1871_p8 = scmp.lt.u32.totalorder %s1863_s12, %s2354_s16 }
 0x670   : > { %p1865_p6 = pnand %p1864_p13, %p2418_p0 }
 0x671   : > { %p1870_p11 = por %p1869_p5, %p1868_p4 }
 0x672   : > { %p1866_p10 = pneg %p1865_p6 }
 0x673   : > { %p1872_p1 = por %p1871_p8, %p1870_p11 }
 0x675   : > { %p1873_p3 = pnand %p1872_p1, %p1866_p10 }
 0x677   : > { %1876 = shalt.err (!%p1873_p3)
}
 0x678   : > { %1636 = dma.vmem_to_hbm [thread:$0]  (%p2418_p0), %s2356_s6, 128, %s2354_s16, %s1334_s22  }
 0x679 PF: > { %s1359_s28 = sand.u32 1, %s1907_s18   ;;  %p2419_p7 = scmp.ne.s32.totalorder %s2409_s25, 0 }
 0x67a   : > { %p2420_p9 = scmp.ge.s32.totalorder %s1919_s21, 2  ;;  %s1360_s7 = scalar_lea.sflag [#allocation5], %s1359_s28 }
 0x67c   : > { %p1650_p12 = pnand %p2420_p9, %p2419_p7 }
 0x67e   : > { %1902 = dma.done.wait (!%p1650_p12), %s1360_s7, 128  }
 0x67f   : > { %1904 = vsyncadd (!%p1650_p12), %s1360_s7, 4294967168  ;;  %p19_p2 = scmp.ge.s32.totalorder %s2099_s14, 4   ;;  %s2421_s18 = smov %s1911_s19 }
 0x680   : > { %s2422_s19 = smov %s1915_s20  ;;  %s2423_s20 = smov %s2115_s27 }
 0x681   : > { %s2424_s21 = smov %s2099_s14  ;;  %21 = sbr.rel (!%p19_p2) target bundleno = 6 (0x6), region = 93 }
 0x688   :  { %1365 = vsyncpa [#allocation4], 1 }
 0x689   :  { %1367 = vsyncpa [#allocation4 + $0x1], 1 }
 0x68a   :  { %1368 = vsyncpa [#allocation7], 1 }
 0x68b   :  { %1369 = vsyncpa [#allocation5], 1 }
 0x68c   :  { %1371 = vsyncpa [#allocation5 + $0x1], 1 }

</bundles_post_ra>
